<compile_context>
chip_gen: v7x
topology: tpu7x:2x2x1
jax: 0.10.0
libtpu: 0.0.40
codegen_flags: <defaults>
</compile_context>

<pallas_src>
import jax
import jax.numpy as jnp
from jax.experimental import pallas as pl
from jax.experimental.pallas import tpu as pltpu


def _laplace_kernel(params_ref, xx_ref, yy_ref, o_ref):
    # params_ref (SMEM): [a, R, phi, P, Q] with
    #   A*cos(t) + B*sin(t)   == R*cos(t - phi)      (R = sqrt(A^2+B^2), phi = atan2(B, A))
    #   C*cosh(u) + D*sinh(u) == P*exp(u) + Q*exp(-u) (P = (C+D)/2,      Q = (C-D)/2)
    a = params_ref[0]
    R = params_ref[1]
    phi = params_ref[2]
    P = params_ref[3]
    Q = params_ref[4]

    t = a * xx_ref[...]
    u = a * yy_ref[...]

    trig = R * jnp.cos(t - phi)   # 1 transcendental (was cos + sin)
    e_pos = jnp.exp(u)
    e_neg = jnp.exp(-u)           # exact exp: approx reciprocal would degrade rtol
    hyp = P * e_pos + Q * e_neg

    o_ref[...] = trig * hyp


def _choose_tiling(spatial, target_tile_elems=256 * 1024):
    """Pick (lane, rows, row_tile) for a (rows, lane) view of the spatial dims.

    lane is a multiple of 128 dividing `spatial` (or the full extent as a
    fallback); row_tile is a multiple of 8 dividing rows (or the full extent),
    sized so one f32 tile stays <= ~1 MiB (3 arrays x 2 buffers ~= 6 MiB VMEM,
    within the 16/32 MiB scoped defaults on v5e / v6e / v7x).
    """
    lane = None
    for cand in (1024, 512, 256, 128):
        if spatial % cand == 0:
            lane = cand
            break
    if lane is None:
        # Spatial extent not a multiple of 128: block dim == full array dim is
        # always legal (just less lane-dense).
        return spatial, 1, 1

    rows = spatial // lane
    max_rows = max(1, target_tile_elems // lane)
    if rows <= max_rows:
        return lane, rows, rows

    row_tile = rows  # fallback: full slab
    for rt in range(8, max_rows + 1, 8):
        if rows % rt == 0:
            row_tile = rt  # keep the largest multiple-of-8 divisor <= max_rows
    return lane, rows, row_tile


def laplace_activation(x, a, A, B, C, D):
    """Pallas TPU forward of LaplaceActivation.

    x: (N, 2, H, W) float32 -> (N, H, W) float32
    """
    N, Cch, H, W = x.shape
    assert Cch == 2, "LaplaceActivation expects 2 channels (xx, yy)"
    S = H * W

    lane, rows, row_tile = _choose_tiling(S)

    # Free contiguous reshape; the channel select is done by the index_maps.
    xr = x.reshape(N, 2, rows, lane)

    a32 = jnp.asarray(a, jnp.float32)
    A32 = jnp.asarray(A, jnp.float32)
    B32 = jnp.asarray(B, jnp.float32)
    C32 = jnp.asarray(C, jnp.float32)
    D32 = jnp.asarray(D, jnp.float32)
    R = jnp.sqrt(A32 * A32 + B32 * B32)
    phi = jnp.arctan2(B32, A32)
    P = 0.5 * (C32 + D32)
    Q = 0.5 * (C32 - D32)
    params = jnp.stack([a32, R, phi, P, Q]).astype(jnp.float32)

    grid = (N, rows // row_tile)

    out = pl.pallas_call(
        _laplace_kernel,
        out_shape=jax.ShapeDtypeStruct((N, rows, lane), jnp.float32),
        grid=grid,
        in_specs=[
            pl.BlockSpec(memory_space=pltpu.MemorySpace.SMEM),  # params (scalars)
            # channel 0 (xx): channel dim squeezed via None, selected in index_map
            pl.BlockSpec((1, None, row_tile, lane), lambda n, r: (n, 0, r, 0)),
            # channel 1 (yy)
            pl.BlockSpec((1, None, row_tile, lane), lambda n, r: (n, 1, r, 0)),
        ],
        out_specs=pl.BlockSpec((1, row_tile, lane), lambda n, r: (n, r, 0)),
        compiler_params=pltpu.CompilerParams(
            dimension_semantics=("parallel", "parallel"),
            vmem_limit_bytes=32 * 1024 * 1024,
        ),
    )(params, xr, xr)

    return out.reshape(N, H, W)


def laplace_activation_ref(x, a, A, B, C, D):
    xx = x[:, 0]
    yy = x[:, 1]
    return (A * jnp.cos(a * xx) + B * jnp.sin(a * xx)) * (
        C * jnp.cosh(a * yy) + D * jnp.sinh(a * yy)
    )


if __name__ == "__main__":
    # Deterministic scalar "parameters" (module __init__ takes a, A, B, C, D).
    a, A, B, C, D = 0.7, 1.1, -0.5, 0.3, 0.9

    key = jax.random.PRNGKey(0)
    N, Cch, H, W = 2, 2, 16, 16
    x = jax.random.normal(key, (N, Cch, H, W), dtype=jnp.float32)

    out = laplace_activation(x, a, A, B, C, D)
    out = jax.block_until_ready(out)

    ref = laplace_activation_ref(x, a, A, B, C, D)
    assert out.shape == (N, H, W)
    assert jnp.allclose(out, ref, atol=1e-5, rtol=1e-5)

    print("KERNEL_OK")
</pallas_src>

<mosaic_0001>
module attributes {stable_mosaic.version = 11 : i64} {
  func.func @_laplace_kernel(%arg0: i32, %arg1: i32, %arg2: memref<5xf32, #tpu.memory_space<smem>>, %arg3: memref<1x1x1x256xf32, #tpu.memory_space<vmem>>, %arg4: memref<1x1x1x256xf32, #tpu.memory_space<vmem>>, %arg5: memref<1x1x256xf32, #tpu.memory_space<vmem>>) attributes {dimension_semantics = [#tpu.dimension_semantics<parallel>, #tpu.dimension_semantics<parallel>], iteration_bounds = array<i64: 2, 1>, scalar_prefetch = 0 : i64, scratch_operands = 0 : i64, tpu.core_type = #tpu.core_type<tc>, window_params = [{transform_indices = @transform_0, window_bounds = array<i64: 5>}, {transform_indices = @transform_1, window_bounds = array<i64: 1, 1, 1, 256>}, {transform_indices = @transform_2, window_bounds = array<i64: 1, 1, 1, 256>}, {transform_indices = @transform_3, window_bounds = array<i64: 1, 1, 256>}]} {
    %c0 = arith.constant 0 : index
    %0 = memref.load %arg2[%c0] : memref<5xf32, #tpu.memory_space<smem>>
    %c1 = arith.constant 1 : index
    %1 = memref.load %arg2[%c1] : memref<5xf32, #tpu.memory_space<smem>>
    %c2 = arith.constant 2 : index
    %2 = memref.load %arg2[%c2] : memref<5xf32, #tpu.memory_space<smem>>
    %c3 = arith.constant 3 : index
    %3 = memref.load %arg2[%c3] : memref<5xf32, #tpu.memory_space<smem>>
    %c4 = arith.constant 4 : index
    %4 = memref.load %arg2[%c4] : memref<5xf32, #tpu.memory_space<smem>>
    %c0_0 = arith.constant 0 : index
    %c0_1 = arith.constant 0 : index
    %c0_2 = arith.constant 0 : index
    %c0_3 = arith.constant 0 : index
    %5 = vector.load %arg3[%c0_0, %c0_1, %c0_2, %c0_3] : memref<1x1x1x256xf32, #tpu.memory_space<vmem>>, vector<1x1x1x256xf32>
    %6 = vector.shape_cast %5 : vector<1x1x1x256xf32> to vector<1x1x256xf32>
    %7 = vector.broadcast %0 : f32 to vector<1x1x256xf32>
    %8 = arith.mulf %7, %6 : vector<1x1x256xf32>
    %c0_4 = arith.constant 0 : index
    %c0_5 = arith.constant 0 : index
    %c0_6 = arith.constant 0 : index
    %c0_7 = arith.constant 0 : index
    %9 = vector.load %arg4[%c0_4, %c0_5, %c0_6, %c0_7] : memref<1x1x1x256xf32, #tpu.memory_space<vmem>>, vector<1x1x1x256xf32>
    %10 = vector.shape_cast %9 : vector<1x1x1x256xf32> to vector<1x1x256xf32>
    %11 = vector.broadcast %0 : f32 to vector<1x1x256xf32>
    %12 = arith.mulf %11, %10 : vector<1x1x256xf32>
    %13 = vector.broadcast %2 : f32 to vector<1x1x256xf32>
    %14 = arith.subf %8, %13 : vector<1x1x256xf32>
    %15 = math.cos %14 : vector<1x1x256xf32>
    %16 = vector.broadcast %1 : f32 to vector<1x1x256xf32>
    %17 = arith.mulf %16, %15 : vector<1x1x256xf32>
    %18 = math.exp %12 : vector<1x1x256xf32>
    %cst = arith.constant 0.000000e+00 : f32
    %19 = vector.broadcast %cst : f32 to vector<1x1x256xf32>
    %20 = arith.subf %19, %12 : vector<1x1x256xf32>
    %21 = math.exp %20 : vector<1x1x256xf32>
    %22 = vector.broadcast %3 : f32 to vector<1x1x256xf32>
    %23 = arith.mulf %22, %18 : vector<1x1x256xf32>
    %24 = vector.broadcast %4 : f32 to vector<1x1x256xf32>
    %25 = arith.mulf %24, %21 : vector<1x1x256xf32>
    %26 = arith.addf %23, %25 : vector<1x1x256xf32>
    %27 = arith.mulf %17, %26 : vector<1x1x256xf32>
    %c0_8 = arith.constant 0 : index
    %c0_9 = arith.constant 0 : index
    %c0_10 = arith.constant 0 : index
    %28 = vector.load %arg5[%c0_8, %c0_9, %c0_10] : memref<1x1x256xf32, #tpu.memory_space<vmem>>, vector<1x1x256xf32>
    tpu.vector_store %arg5[%c0_8, %c0_9, %c0_10], %27 {strides = array<i32>} : memref<1x1x256xf32, #tpu.memory_space<vmem>>, vector<1x1x256xf32>,
    return
  }
  func.func @transform_0(%arg0: i32, %arg1: i32) -> i32 {
    %c0_i32 = arith.constant 0 : i32
    %c0_i32_0 = arith.constant 0 : i32
    return %c0_i32 : i32
  }
  func.func @transform_1(%arg0: i32, %arg1: i32) -> (i32, i32, i32, i32) {
    %c0_i32 = arith.constant 0 : i32
    %c0_i32_0 = arith.constant 0 : i32
    %c0_i32_1 = arith.constant 0 : i32
    return %arg0, %c0_i32, %arg1, %c0_i32_0 : i32, i32, i32, i32
  }
  func.func @transform_2(%arg0: i32, %arg1: i32) -> (i32, i32, i32, i32) {
    %c1_i32 = arith.constant 1 : i32
    %c0_i32 = arith.constant 0 : i32
    %c0_i32_0 = arith.constant 0 : i32
    return %arg0, %c1_i32, %arg1, %c0_i32 : i32, i32, i32, i32
  }
  func.func @transform_3(%arg0: i32, %arg1: i32) -> (i32, i32, i32) {
    %c0_i32 = arith.constant 0 : i32
    %c0_i32_0 = arith.constant 0 : i32
    return %arg0, %arg1, %c0_i32 : i32, i32, i32
  }
}

</mosaic_0001>

<bundles_post_ra>
// kernel: tpu_custom_call.1
= control target key start
LH: loop header
LB: loop body
LE: loop exit
PB: predicated region body
PF: predicated region fallthrough
CT: control target
= control target key end

     0   :  { %s1155_s0 = inlined_call_operand.hbm [shape: f32[5], index: 0, kind: input, shape index: {}]   ;;  %s1156_s1 = inlined_call_operand.hbm [shape: f32[2,2,1,256], index: 1, kind: input, shape index: {}]   ;;  %s1157_s2 = inlined_call_operand.hbm [shape: f32[2,2,1,256], index: 2, kind: input, shape index: {}]   ;;  %s1158_s3 = inlined_call_operand.hbm [shape: f32[2,1,256], index: 3, kind: output, shape index: {}]  }
   0x1   :  { %1165 = sst [smem:[#allocation14_spill]] %s1155_s0 }
   0x2   :  { %8 = vsyncpa [#allocation5], 0 }
   0x3   :  { %9 = vsyncpa [#allocation3], 0 }
   0x4   :  { %11 = vsyncpa [#allocation3 + $0x1], 0 }
   0x5   :  { %12 = vsyncpa [#allocation8], 0 }
   0x6   :  { %14 = vsyncpa [#allocation8 + $0x1], 0 }
   0x7   :  { %15 = vsyncpa [#allocation4], 0 }
   0x8   :  { %17 = vsyncpa [#allocation4 + $0x1], 0  ;;  %s857_s12 = smov 0   ;;  %s859_s13 = smov 0  }
   0x9   :  { %s861_s14 = smov 0   ;;  %s863_s15 = smov 0  }
   0xa   :  { %s865_s16 = smov 0   ;;  %s867_s17 = smov 0  }
   0xb LB: > { %s533_s18 = sadd.s32 4294967295, %s825_s17   ;;  %s534_s19 = sadd.s32 4294967294, %s825_s17   ;;  %s825_s17 = sphi %s867_s17, %s23_s17   ;;  %s821_s16 = sphi %s865_s16, %s1187_s16   ;;  %s817_s15 = sphi %s863_s15, %s1186_s15   ;;  %s813_s14 = sphi %s861_s14, %s1185_s14   ;;  %s809_s13 = sphi %s859_s13, %s1184_s13   ;;  %s805_s12 = sphi %s857_s12, %s1183_s12  }
   0xc   : > { %p72_p0 = scmp.ne.s32.totalorder %s813_s14, %s809_s13  ;;  %p78_p1 = scmp.ne.s32.totalorder %s809_s13, %s805_s12 }
   0xd   : > { %p893_p2 = scmp.eq.s32.totalorder %s533_s18, 0  ;;  %p132_p3 = scmp.eq.s32.totalorder %s533_s18, 1 }
   0xe   : > { %p138_p4 = scmp.eq.s32.totalorder %s534_s19, 1  ;;  %p535_p5 = scmp.ge.s32.totalorder %s825_s17, 1 }
   0xf   : > { %s1166_s20 = scalar_select %p893_p2, 1, 0 }
  0x10   : > { %p900_p6 = por %p893_p2, %p78_p1  ;;  %p907_p7 = por %p132_p3, %p72_p0 }
  0x11   : > { %p911_p8 = por %p138_p4, %p78_p1  ;;  %p145_p9 = scmp.lt.s32.totalorder %s825_s17, 3 }
  0x12   : > { %s1167_s21 = scalar_select %p900_p6, 1, 0 }
  0x13   : > { %s1168_s22 = scalar_select %p907_p7, 1, 0 }
  0x14   : > { %s1169_s23 = scalar_select %p911_p8, 1, 0 }
  0x15   : > { %p916_p10 = pnand %p535_p5, %p145_p9  ;;  %s65_s25 = sadd.s32 1, %s813_s14 }
  0x16   : > { %s35_s26 = sadd.s32 1, %s821_s16  ;;  %p73_p13 = scmp.eq.s32.totalorder %s825_s17, 0 }
  0x17   : > { %s1170_s24 = scalar_select %p916_p10, 1, 0 }
  0x18   : > { %p579_p12 = pneg %p916_p10  ;;  %p932_p1 = scmp.ge.s32.totalorder %s35_s26, 2 }
  0x19   : > { %p939_p4 = por %p73_p13, %p72_p0  ;;  %p595_p5 = scmp.lt.s32.totalorder %s825_s17, 2 }
  0x1a   : > { %p928_p3 = pnand %p579_p12, %p893_p2  ;;  %s945_s30 = sand.u32 1, %s813_s14  }
  0x1b   : > { %s1174_s0 = sld [smem:[#allocation14_spill]] }
  0x1c   : > { %p663_p12 = pneg %p928_p3 }
  0x21   : > { %s661_s6 = scalar_lea.hbm %s1174_s0, 16 }
  0x22   : > { %p662_p9 = scmp.ne.s32.totalorder %s1174_s0, %s661_s6  ;;  %p668_p0 = scmp.lt.u32.totalorder %s661_s6, %s1174_s0 }
  0x24   : > { %p664_p11 = pnand %p663_p12, %p662_p9 }
  0x26   : > { %p665_p8 = pneg %p664_p11 }
  0x28   : > { %p670_p13 = pnand %p668_p0, %p665_p8 }
  0x2a   : > { %673 = shalt.err (!%p670_p13)
}
  0x2b   : > { %s827_s11 = smov [#allocation2]   ;;  %s1189_s26 = smov (%p932_p1, %s35_s26), 0 }
  0x2c   : > { %582 = dma.hbm_to_smem (!%p928_p3), %s1174_s0, 16, %s827_s11, [#allocation5]  }
  0x2d   : > { %s1159_s4 = sshll.u32 %s945_s30, 1  ;;  %s60_s5 = ssub.s32 %s821_s16, %s1189_s26 }
  0x2e   : > { %p63_p8 = scmp.eq.s32.totalorder %s60_s5, 0  ;;  %s562_s27 = sshll.u32 %s821_s16, 6 }
  0x2f   : > { %s974_s8 = scalar_lea.hbm %s1156_s1, %s562_s27  ;;  %s171_s9 = scalar_lea.vmem [#allocation6], %s1159_s4 }
  0x30   : > { %s181_s10 = sshll.u32 %s171_s9, 4  ;;  %p987_p11 = pnand %p595_p5, %p939_p4  ;;  %s981_s10 = int_to_ptr.vmem [resolvable:$true] %s181_s10 }
  0x31   : > { %s979_s28 = scalar_select %p63_p8, %s813_s14, %s65_s25  }
  0x32   : > { %s994_s5 = scalar_lea.hbm %s1157_s2, %s562_s27  ;;  %s168_s6 = scalar_lea.sflag [#allocation3], %s945_s30 }
  0x33   : > { %s674_s7 = scalar_lea.hbm %s974_s8, 32  ;;  %p676_p1 = pneg %p987_p11 }
  0x34   : > { %p675_p3 = scmp.ne.s32.totalorder %s974_s8, %s674_s7  ;;  %s679_s9 = scalar_lea.hbm %s1156_s1, 128 }
  0x35   : > { %p680_p4 = scmp.lt.u32.totalorder %s974_s8, %s1156_s1  ;;  %p681_p5 = scmp.lt.u32.totalorder %s679_s9, %s674_s7 }
  0x36   : > { %p677_p9 = pnand %p676_p1, %p675_p3  ;;  %p683_p13 = scmp.lt.u32.totalorder %s674_s7, %s974_s8 }
  0x37   : > { %p682_p0 = por %p681_p5, %p680_p4 }
  0x38   : > { %p678_p12 = pneg %p677_p9 }
  0x39   : > { %p684_p8 = por %p683_p13, %p682_p0 }
  0x3b   : > { %p685_p7 = pnand %p684_p8, %p678_p12 }
  0x3d   : > { %688 = shalt.err (!%p685_p7)
}
  0x3e   : > { %s689_s27 = scalar_lea.vmem %s981_s10, 32  ;;  %s828_s18 = smov [#allocation6]  }
  0x3f   : > { %p690_p3 = scmp.ne.s32.totalorder %s981_s10, %s689_s27  ;;  %s694_s19 = sshll.u32 %s828_s18, 4  ;;  %s695_s19 = int_to_ptr.vmem [resolvable:$false] %s694_s19 }
  0x40   : > { %s696_s0 = scalar_lea.vmem %s695_s19, 64  ;;  %p697_p2 = scmp.lt.s32.totalorder %s981_s10, %s695_s19 }
  0x41   : > { %p692_p9 = pnand %p690_p3, %p676_p1  ;;  %p698_p4 = scmp.lt.s32.totalorder %s696_s0, %s689_s27 }
  0x43   : > { %p693_p6 = pneg %p692_p9  ;;  %p699_p5 = por %p698_p4, %p697_p2 }
  0x45   : > { %p700_p0 = pnand %p699_p5, %p693_p6 }
  0x47   : > { %703 = shalt.err (!%p700_p0)
}
  0x48   : > { %586 = dma.hbm_to_vmem [thread:$0]  (!%p987_p11), %s974_s8, 32, %s981_s10, %s168_s6  }
  0x49   : > { %s1023_s4 = scalar_lea.hbm %s994_s5, 32  ;;  %s1176_s7 = sshll.u32 %s945_s30, 1 }
  0x4a   : > { %s192_s25 = scalar_lea.vmem [#allocation7], %s1176_s7  ;;  %s189_s9 = scalar_lea.sflag [#allocation8], %s945_s30 }
  0x4b   : > { %s203_s29 = sshll.u32 %s192_s25, 4  ;;  %s734_s27 = scalar_lea.hbm %s994_s5, 64  ;;  %s204_s29 = int_to_ptr.vmem [resolvable:$true] %s203_s29 }
  0x4c   : > { %p705_p2 = scmp.ne.s32.totalorder %s1023_s4, %s734_s27  ;;  %s709_s8 = scalar_lea.hbm %s1157_s2, 128 }
  0x4d   : > { %p710_p12 = scmp.lt.u32.totalorder %s1023_s4, %s1157_s2  ;;  %p711_p13 = scmp.lt.u32.totalorder %s709_s8, %s734_s27 }
  0x4e   : > { %p707_p6 = pnand %p705_p2, %p676_p1  ;;  %p713_p3 = scmp.lt.u32.totalorder %s734_s27, %s1023_s4 }
  0x4f   : > { %p712_p8 = por %p711_p13, %p710_p12 }
  0x50   : > { %p708_p7 = pneg %p707_p6 }
  0x51   : > { %p714_p9 = por %p713_p3, %p712_p8 }
  0x53   : > { %p715_p4 = pnand %p714_p9, %p708_p7 }
  0x55   : > { %718 = shalt.err (!%p715_p4)
}
  0x56   : > { %s719_s30 = scalar_lea.vmem %s204_s29, 32  ;;  %s829_s5 = smov [#allocation7]  }
  0x57   : > { %p720_p5 = scmp.ne.s32.totalorder %s204_s29, %s719_s30  ;;  %s724_s0 = sshll.u32 %s829_s5, 4  ;;  %s725_s0 = int_to_ptr.vmem [resolvable:$false] %s724_s0 }
  0x58   : > { %s726_s7 = scalar_lea.vmem %s725_s0, 64  ;;  %p727_p6 = scmp.lt.s32.totalorder %s204_s29, %s725_s0 }
  0x59   : > { %p722_p0 = pnand %p720_p5, %p676_p1  ;;  %p728_p10 = scmp.lt.s32.totalorder %s726_s7, %s719_s30 }
  0x5b   : > { %p723_p2 = pneg %p722_p0  ;;  %p729_p12 = por %p728_p10, %p727_p6 }
  0x5d   : > { %p730_p13 = pnand %p729_p12, %p723_p2 }
  0x5f   : > { %733 = shalt.err (!%p730_p13)
}
  0x60   : > { %589 = dma.hbm_to_vmem [thread:$0]  (!%p987_p11), %s1023_s4, 32, %s204_s29, %s189_s9  }
  0x61   : > { %p1177_p7 = scmp.ne.s32.totalorder %s1170_s24, 0 }
  0x62   : > { %p1178_p8 = scmp.ne.s32.totalorder (!%p1177_p7), %s1166_s20, 0 }
  0x63   : > { %212 = sbr.rel (%p1177_p7) target bundleno = 224 (0xe0), region = 32 }
  0x6a   : > { %788 = dma.done.wait (%p1178_p8), [#allocation5], 16  }
  0x6b   : > { %790 = vsyncadd (%p1178_p8), [#allocation5], 4294967280  ;;  %s1054_s25 = sand.u32 1, %s809_s13   ;;  %p1179_p10 = scmp.ne.s32.totalorder %s1167_s21, 0 }
  0x6c   : > { %s1057_s27 = sshll.u32 %s1054_s25, 1  ;;  %s219_s11 = scalar_lea.sflag [#allocation3], %s1054_s25 }
  0x6d   : > { %s222_s4 = scalar_lea.vmem [#allocation6], %s1057_s27 }
  0x6e   : > { %792 = dma.done.wait (%p1179_p10), %s219_s11, 32  }
  0x6f   : > { %794 = vsyncadd (%p1179_p10), %s219_s11, 4294967264  ;;  %s228_s20 = scalar_lea.sflag [#allocation8], %s1054_s25  ;;  %s231_s24 = scalar_lea.vmem [#allocation7], %s1057_s27 }
  0x70   : > { %796 = dma.done.wait (%p1179_p10), %s228_s20, 32  }
  0x71   : > { %798 = vsyncadd (%p1179_p10), %s228_s20, 4294967264 }
  0x72   : > { %236 = sfence }
  0x73   : > { %s1071_s29 = sld [smem:[#allocation2]]  ;;  %s550_s9 = sld [smem:[#allocation2 + $0x2]]  ;;  %v265_v0 = vld [vmem:[%s222_s4] sm:$0x3]  ;;  %v830_v16 = vmov 683565275  }
  0x74   : > { %v831_v18 = vmov 2475754826   ;;  %v832_v20 = vmov 2131351028   ;;  %v833_v22 = vmov 2102212464  }
  0x75   : > { %v834_v24 = vmov 920167782   ;;  %v835_v31 = vmov 1326507024   ;;  %s551_s21 = sld [smem:[#allocation2 + $0x3]]  ;;  %s552_s18 = sld [smem:[#allocation2 + $0x4]] }
  0x76   : > { %s549_s19 = sld [smem:[#allocation2 + $0x1]]  ;;  %s564_s8 = sshll.u32 %s817_s15, 5 }
  0x77   : > { %s259_s10 = scalar_lea.vmem [#allocation9], %s1057_s27  ;;  %s1106_s0 = scalar_lea.hbm %s1158_s3, %s564_s8 }
  0x78   : > { %s410_s6 = sshll.u32 %s259_s10, 4  ;;  %s394_s7 = scalar_lea.sflag [#allocation4], %s1054_s25  ;;  %s1108_s6 = int_to_ptr.vmem [resolvable:$true] %s410_s6 }
  0x79   : > { %v266_v1 = vstv %s1071_s29  ;;  %v270_v3 = vstv %s550_s9  ;;  %s735_s11 = scalar_lea.vmem %s1108_s6, 32  ;;  %p1180_p1 = scmp.ne.s32.totalorder %s1168_s22, 0 }
  0x7a   : > { %v267_v2 = vmul.f32 %v266_v1, %v265_v0  ;;  %p736_p11 = scmp.ne.s32.totalorder %s1108_s6, %s735_s11  ;;  %s836_s15 = smov [#allocation9]  }
  0x7b   : > { %s739_s27 = sshll.u32 %s836_s15, 4  ;;  %s740_s27 = int_to_ptr.vmem [resolvable:$false] %s739_s27 }
  0x7c   : > { %v1076_v4 = vsub.f32 %v267_v2, %v270_v3  ;;  %p737_p3 = pnand %p736_p11, %p1180_p1  ;;  %s741_s4 = scalar_lea.vmem %s740_s27, 64 }
  0x7d   : > { %p742_p4 = scmp.lt.s32.totalorder %s1108_s6, %s740_s27  ;;  %p743_p5 = scmp.lt.s32.totalorder %s741_s4, %s735_s11 }
  0x7e   : > { %v275_v5 = vand.u32 2139095040, %v1076_v4  ;;  %v272_v7 = vand.u32 2147483647, %v1076_v4  ;;  %vm274_vm7 = vcmp.lt.s32.totalorder %v1076_v4, 0  ;;  %vm364_vm12 = vweird.f32 %v1076_v4  ;;  %p738_p9 = pneg %p737_p3 }
  0x7f   : > { %p744_p0 = por %p743_p5, %p742_p4 }
  0x80   : > { %v276_v6 = vshrl.u32 %v275_v5, 23  ;;  %v279_v10 = vand.u32 8388607, %v272_v7  ;;  %vm273_vm8 = vcmp.le.f32.partialorder %v272_v7, 0.7853982 }
  0x81   : > { %p745_p2 = pnand %p744_p0, %p738_p9 }
  0x82   : > { %v553_v8 = vadd.s32 4294967169, %v276_v6  ;;  %v280_v13 = vor.u32 8388608, %v279_v10  ;;  %v268_v6 = vld [vmem:[%s231_s24] sm:$0x3] }
  0x84   : > { %v282_v9 = vadd.s32 1, %v553_v8  ;;  %v320_v33 = vshll.u32 %v280_v13, 8 }
  0x86   : > { %vm283_vm0 = vcmp.gt.s32.totalorder %v282_v9, 0 }
  0x87   : > { %v284_v11 = vsel %vm283_vm0, %v282_v9, 0 }
  0x88   : > { %v286_v12 = vand.u32 31, %v284_v11  ;;  %v285_v14 = vshrl.u32 %v284_v11, 5 }
  0x8a   : > { %v287_v15 = vsub.s32 32, %v286_v12  ;;  %v289_v17 = vshll.u32 %v830_v16, %v286_v12  ;;  %v292_v19 = vshll.u32 %v831_v18, %v286_v12  ;;  %v295_v21 = vshll.u32 %v832_v20, %v286_v12 }
  0x8b   : > { %v298_v23 = vshll.u32 %v833_v22, %v286_v12  ;;  %v301_v25 = vshll.u32 %v834_v24, %v286_v12  ;;  %vm304_vm1 = vcmp.lt.s32.totalorder %v285_v14, 1  ;;  %vm307_vm2 = vcmp.lt.s32.totalorder %v285_v14, 4 }
  0x8c   : > { %v288_v26 = vshrl.u32 %v830_v16, %v287_v15  ;;  %v290_v27 = vshrl.u32 %v831_v18, %v287_v15  ;;  %v293_v28 = vshrl.u32 %v832_v20, %v287_v15  ;;  %v296_v29 = vshrl.u32 %v833_v22, %v287_v15 }
  0x8d   : > { %v299_v30 = vshrl.u32 %v834_v24, %v287_v15  ;;  %v302_v32 = vshrl.u32 %v835_v31, %v287_v15  ;;  %vm305_vm3 = vcmp.lt.s32.totalorder %v285_v14, 2  ;;  %vm306_vm4 = vcmp.lt.s32.totalorder %v285_v14, 3 }
  0x8e   : > { %v291_v34 = vor.u32 %v290_v27, %v289_v17  ;;  %v294_v35 = vor.u32 %v293_v28, %v292_v19  ;;  %v297_v36 = vor.u32 %v296_v29, %v295_v21  ;;  %v269_v12 = vmul.f32 %v268_v6, %v266_v1 }
  0x8f   : > { %v300_v37 = vor.u32 %v299_v30, %v298_v23  ;;  %v303_v38 = vor.u32 %v302_v32, %v301_v25  ;;  %v382_v32 = vstv %s551_s21 }
  0x90   : > { %v308_v39 = vsel %vm304_vm1, %v288_v26, %v291_v34  ;;  %v309_v40 = vsel %vm307_vm2, %v297_v36, 2102212464  ;;  %v312_v41 = vsel %vm304_vm1, %v291_v34, %v294_v35  ;;  %v316_v42 = vsel %vm304_vm1, %v294_v35, %v297_v36 }
  0x91   : > { %v310_v43 = vsel %vm306_vm4, %v294_v35, %v309_v40  ;;  %v313_v44 = vsel %vm307_vm2, %v300_v37, 920167782  ;;  %v317_v45 = vsel %vm307_vm2, %v303_v38, 1326507024  ;;  %v379_v19 = vsub.f32 0.0, %v269_v12 }
  0x92   : > { %v314_v46 = vsel %vm306_vm4, %v297_v36, %v313_v44  ;;  %v318_v47 = vsel %vm306_vm4, %v300_v37, %v317_v45  ;;  %v311_v48 = vsel %vm305_vm3, %v308_v39, %v310_v43  ;;  %v377_v21 = vmul.f32 1.442695, %v269_v12 }
  0x93   : > { %v315_v49 = vsel %vm305_vm3, %v312_v41, %v314_v46  ;;  %v319_v50 = vsel %vm305_vm3, %v316_v42, %v318_v47  ;;  %v327_v55 = vmul.u32 %v320_v33, %v311_v48  ;;  %v380_v23 = vmul.f32 1.442695, %v379_v19 }
  0x94   : > { %v1082_v51 = vmul.u32.u64.low %v320_v33, %v319_v50  ;;  %v1083_v52 = vmul.u32.u64.high %v320_v33, %v319_v50, %v1082_v51  ;;  %v1085_v53 = vmul.u32.u64.low %v320_v33, %v315_v49  ;;  %v1086_v54 = vmul.u32.u64.high %v320_v33, %v315_v49, %v1085_v53 }
  0x95   : > { %653 = vpow2.f32 %v377_v21  ;;  %v384_v33 = vstv %s552_s18  ;;  %v375_v41 = vstv %s549_s19  ;;  %v388_v42 = vlaneseq }
  0x96   : > { %vm329_vm5 = vc.u32 %v1083_v52, %v1085_v53  ;;  %v330_v56 = vadd.s32 1, %v1086_v54  ;;  %v328_v5 = vadd.s32 %v1085_v53, %v1083_v52  ;;  %655 = vpow2.f32 %v380_v23 }
  0x97   : > { %vm390_vm13 = vcmp.lt.s32.totalorder %v388_v42, 256 }
  0x98   : > { %v331_v57 = vsel %vm329_vm5, %v330_v56, %v1086_v54 }
  0x99   : > { %v332_v58 = vadd.s32 %v331_v57, %v327_v55 }
  0x9b   : > { %v333_v59 = vadd.s32 536870912, %v332_v58 }
  0x9d   : > { %v334_v60 = vshrl.u32 %v333_v59, 30 }
  0x9f   : > { %v335_v61 = vshll.u32 %v334_v60, 30  ;;  %v358_v25 = vsub.s32 4, %v334_v60  ;;  %v654_v30 = vpop.eup %653 }
  0xa0   : > { %v656_v31 = vpop.eup %655  ;;  %v383_v36 = vmul.f32 %v654_v30, %v382_v32 }
  0xa1   : > { %v336_v62 = vsub.s32 %v332_v58, %v335_v61  ;;  %v359_v27 = vsel %vm274_vm7, %v358_v25, %v334_v60  ;;  %v385_v37 = vmul.f32 %v656_v31, %v384_v33 }
  0xa2   : > { %v361_v28 = vsel %vm273_vm8, 0, %v359_v27 }
  0xa3   : > { %v338_v63 = vsub.s32 0, %v336_v62  ;;  %v365_v29 = vand.u32 3, %v361_v28  ;;  %v386_v44 = vadd.f32 %v385_v37, %v383_v36 }
  0xa5   : > { %v554_v0 = vmin.u32 %v338_v63, %v336_v62  ;;  %vm370_vm9 = vcmp.eq.s32.totalorder %v365_v29, 2  ;;  %vm367_vm10 = vcmp.eq.s32.totalorder %v365_v29, 0  ;;  %vm366_vm11 = vcmp.lt.s32.totalorder %v365_v29, 2 }
  0xa7   : > { %v340_v2 = vclz %v554_v0 }
  0xa9   : > { %v555_v3 = vadd.s32 4294967294, %v340_v2 }
  0xab   : > { %vm556_vm6 = vcmp.lt.s32.totalorder %v555_v3, 0 }
  0xac   : > { %v343_v8 = vsel %vm556_vm6, 0, %v555_v3 }
  0xad   : > { %v344_v9 = vsub.s32 32, %v343_v8  ;;  %v345_v10 = vshll.u32 %v336_v62, %v343_v8  ;;  %v348_v11 = vsub.s32 4294967266, %v343_v8 }
  0xaf   : > { %v346_v13 = vshrl.u32 %v328_v5, %v344_v9  ;;  %v349_v14 = vadd.s32 127, %v348_v11 }
  0xb1   : > { %v347_v15 = vor.u32 %v346_v13, %v345_v10  ;;  %v350_v16 = vshll.u32 %v349_v14, 23 }
  0xb3   : > { %v351_v17 = vor.u32 4788187, %v350_v16  ;;  %v354_v18 = vcvt.s32.f32 %v347_v15 }
  0xb5   : > { %v352_v20 = vand.u32 2147483647, %v351_v17 }
  0xb7   : > { %v355_v22 = vmul.f32 %v354_v18, %v352_v20 }
  0xb9   : > { %v356_v24 = vxor.u32 2147483648, %v355_v22 }
  0xbb   : > { %v357_v1 = vsel %vm274_vm7, %v356_v24, %v355_v22 }
  0xbc   : > { %v360_v26 = vsel %vm273_vm8, %v1076_v4, %v357_v1 }
  0xbd   : > { %657 = vcosq.f32 %v360_v26 }
  0xbe   : > { %659 = vsinq.f32 %v360_v26 }
  0xc7   : > { %v658_v7 = vpop.eup %657 }
  0xc8   : > { %v660_v34 = vpop.eup %659  ;;  %v371_v35 = vxor.u32 2147483648, %v658_v7 }
  0xc9   : > { %v368_v38 = vxor.u32 2147483648, %v660_v34 }
  0xca   : > { %v372_v39 = vsel %vm370_vm9, %v371_v35, %v660_v34 }
  0xcb   : > { %v369_v40 = vsel %vm367_vm10, %v658_v7, %v368_v38 }
  0xcc   : > { %v373_v43 = vsel %vm366_vm11, %v369_v40, %v372_v39 }
  0xcd   : > { %v374_v45 = vsel %vm364_vm12, nan, %v373_v43 }
  0xce   : > { %v376_v46 = vmul.f32 %v375_v41, %v374_v45 }
  0xd0   : > { %v387_v47 = vmul.f32 %v386_v44, %v376_v46 }
  0xd2   : > { %392 = vst.msk [vmem:[%s259_s10] sm:$0x3] %vm390_vm13, %v387_v47 }
  0xd3   : > { %748 = shalt.err (!%p745_p2)
}
  0xd4   : > { %s749_s25 = scalar_lea.hbm %s1106_s0, 32  ;;  %s753_s29 = scalar_lea.hbm %s1158_s3, 64 }
  0xd5   : > { %p750_p6 = scmp.ne.s32.totalorder %s1106_s0, %s749_s25  ;;  %p754_p7 = scmp.lt.u32.totalorder %s1106_s0, %s1158_s3 }
  0xd6   : > { %p755_p8 = scmp.lt.u32.totalorder %s753_s29, %s749_s25  ;;  %p757_p11 = scmp.lt.u32.totalorder %s749_s25, %s1106_s0 }
  0xd7   : > { %p751_p12 = pnand %p750_p6, %p1180_p1 }
  0xd8   : > { %p756_p10 = por %p755_p8, %p754_p7 }
  0xd9   : > { %p752_p13 = pneg %p751_p12 }
  0xda   : > { %p758_p3 = por %p757_p11, %p756_p10 }
  0xdc   : > { %p759_p9 = pnand %p758_p3, %p752_p13 }
  0xde   : > { %762 = shalt.err (!%p759_p9)
}
  0xdf   : > { %577 = dma.vmem_to_hbm [thread:$0]  (%p1180_p1), %s1108_s6, 32, %s1106_s0, %s394_s7  }
  0xe0 PF: > { %s422_s18 = sand.u32 1, %s805_s12   ;;  %p1181_p4 = scmp.ne.s32.totalorder %s1169_s23, 0 }
  0xe1   : > { %p1182_p5 = scmp.ge.s32.totalorder %s825_s17, 2  ;;  %s423_s19 = scalar_lea.sflag [#allocation4], %s422_s18 }
  0xe3   : > { %p591_p0 = pnand %p1182_p5, %p1181_p4 }
  0xe5   : > { %800 = dma.done.wait (!%p591_p0), %s423_s19, 32  }
  0xe6   : > { %802 = vsyncadd (!%p591_p0), %s423_s19, 4294967264  ;;  %s23_s17 = sadd.s32 1, %s825_s17   ;;  %s1183_s12 = smov %s809_s13 }
  0xe7   : > { %p20_p2 = scmp.ge.s32.totalorder %s23_s17, 4   ;;  %s1184_s13 = smov %s813_s14 }
  0xe8   : > { %s1185_s14 = smov %s979_s28  ;;  %s1186_s15 = smov %s821_s16 }
  0xe9   : > { %s1187_s16 = smov %s1189_s26  ;;  %22 = sbr.rel (!%p20_p2) target bundleno = 11 (0xb), region = 95 }
  0xf0   :  { %428 = vsyncpa [#allocation3], 1 }
  0xf1   :  { %430 = vsyncpa [#allocation3 + $0x1], 1 }
  0xf2   :  { %431 = vsyncpa [#allocation8], 1 }
  0xf3   :  { %433 = vsyncpa [#allocation8 + $0x1], 1 }
  0xf4   :  { %434 = vsyncpa [#allocation4], 1 }
  0xf5   :  { %436 = vsyncpa [#allocation4 + $0x1], 1 }
  0xf6   :  { %437 = vsyncpa [#allocation5], 1 }
  0xf7   :  { %439 = vsyncpa [#allocation5 + $0x1], 1 }

</bundles_post_ra>
